<compile_context>
chip_gen: v7x
topology: tpu7x:2x2x1
jax: 0.10.0
libtpu: 0.0.40
codegen_flags: <defaults>
</compile_context>

<pallas_src>
import functools

import jax
import jax.numpy as jnp
from jax import lax
from jax.experimental import pallas as pl
from jax.experimental.pallas import tpu as pltpu


def _round_up(v, m):
    return ((v + m - 1) // m) * m


def _nr_recip(x):
    """EUP approx reciprocal + one Newton-Raphson step (~1e-6 rel err, VALU-cheap)."""
    r = pl.reciprocal(x, approx=True)
    return r * (2.0 - x * r)


def _invariant_spec(block_shape, index_map):
    """Grid-invariant operand: fetched once, so request single buffering (halves its
    VMEM footprint; matters on v7x 64 MiB / v5e 16 MiB scoped VMEM). Falls back to a
    plain BlockSpec on jax versions without pipeline_mode / Buffered."""
    try:
        return pl.BlockSpec(block_shape, index_map, pipeline_mode=pl.Buffered(1))
    except Exception:  # pragma: no cover - older jax
        return pl.BlockSpec(block_shape, index_map)


# ------------- pass 1: Student-t assignment q, decoder, per-tile f / MSE partials -------------
def _assign_decode_kernel(x_ref, c_ref, csq_ref, w1_ref, b1_ref, w2_ref, b2_ref,
                          q_ref, recon_ref, fpart_ref, msepart_ref,
                          *, n_rows, n_features, tile_n):
    x = x_ref[...]                                    # [tile_n, Dp] f32
    xb = x.astype(jnp.bfloat16)                       # bf16 MXU operands, f32 accumulation

    # ---- Student-t (nu=1) soft assignment ----
    # ||x-mu||^2 = ||x||^2 + ||mu||^2 - 2 x.mu ; transpose folded into dot_general.
    x_sq = jnp.sum(x * x, axis=-1, keepdims=True)                       # [tile_n, 1]
    xc = lax.dot_general(xb, c_ref[...],
                         dimension_numbers=(((1,), (1,)), ((), ())),
                         preferred_element_type=jnp.float32)            # [tile_n, Kp]
    d2 = jnp.maximum(x_sq + csq_ref[...] - 2.0 * xc, 0.0)
    # padded cluster columns carry csq = 1e30 -> q_un underflows to ~0, no mask needed
    q_un = 1.0 / (1.0 + d2)
    q = q_un * _nr_recip(jnp.sum(q_un, axis=-1, keepdims=True))
    q_ref[...] = q

    # per-tile column sums of q over real rows only (for whole-batch frequencies f)
    if n_rows % tile_n != 0:
        rows = lax.broadcasted_iota(jnp.int32, (tile_n, 1), 0) + pl.program_id(0) * tile_n
        valid = (rows < n_rows).astype(jnp.float32)
    else:
        valid = None
    colsum = jnp.sum(q if valid is None else q * valid, axis=0, keepdims=True)  # [1, Kp]
    fpart_ref[...] = jnp.broadcast_to(colsum[None], fpart_ref.shape)

    # ---- decoder (2-layer MLP) + per-tile MSE partial ----
    h = jnp.maximum(
        jnp.dot(xb, w1_ref[...], preferred_element_type=jnp.float32) + b1_ref[...], 0.0)
    recon = jnp.dot(h.astype(jnp.bfloat16), w2_ref[...],
                    preferred_element_type=jnp.float32) + b2_ref[...]
    recon_ref[...] = recon

    diff = recon - x                   # padded feature columns are exactly 0 on both sides
    if valid is not None:
        diff = diff * valid
    mse_part = jnp.sum(diff * diff) * (1.0 / (n_rows * n_features))
    msepart_ref[...] = jnp.full(msepart_ref.shape, mse_part, dtype=jnp.float32)


# ------------- pass 2: target distribution P and KL(P||Q) (needs whole-batch f) -------------
def _kl_kernel(q_ref, f_ref, klpart_ref, *, n_rows, tile_n):
    q = q_ref[...]                                    # [tile_n, Kp]
    f = f_ref[...]                                    # [1, Kp] whole-batch soft counts
    tiny, eps = 1e-12, 1e-8

    inv_f = _nr_recip(f + tiny)
    p_un = (q * q) * inv_f
    z = jnp.sum(p_un, axis=-1, keepdims=True)         # [tile_n, 1]
    p = p_un * _nr_recip(z)
    # KL(P||Q), batchmean, via p/q = q/(f*z): one full-size log + two small ones.
    log_ratio = jnp.log(q + eps) - jnp.log(f + tiny) - jnp.log(z)
    contrib = p * log_ratio
    if n_rows % tile_n != 0:
        rows = lax.broadcasted_iota(jnp.int32, (tile_n, 1), 0) + pl.program_id(0) * tile_n
        contrib = contrib * (rows < n_rows).astype(jnp.float32)
    kl_part = jnp.sum(contrib) * (1.0 / n_rows)
    klpart_ref[...] = jnp.full(klpart_ref.shape, kl_part, dtype=jnp.float32)


# ------------------------------------- host wrappers -------------------------------------
def prepare_cluster_params(centers, w1, b1, w2, b2):
    """Pad (lane-dense) + cast the call-invariant parameters once, outside the hot path."""
    k, d = centers.shape
    h = w1.shape[1]
    dp, kp, hp = _round_up(d, 128), _round_up(k, 128), _round_up(h, 128)
    f32, bf16 = jnp.float32, jnp.bfloat16

    c32 = centers.astype(f32)
    # padded cluster columns get ||mu||^2 = 1e30 so their q underflows to ~0 in-kernel
    c_sq = jnp.pad(jnp.sum(c32 * c32, axis=1)[None, :], ((0, 0), (0, kp - k)),
                   constant_values=1e30)
    return dict(
        d=d, k=k, h=h, dp=dp, kp=kp, hp=hp,
        c=jnp.pad(c32, ((0, kp - k), (0, dp - d))).astype(bf16),
        c_sq=c_sq,
        w1=jnp.pad(w1.astype(f32), ((0, dp - d), (0, hp - h))).astype(bf16),
        b1=jnp.pad(b1.astype(f32).reshape(1, -1), ((0, 0), (0, hp - h))),
        w2=jnp.pad(w2.astype(f32), ((0, hp - h), (0, dp - d))).astype(bf16),
        b2=jnp.pad(b2.astype(f32).reshape(1, -1), ((0, 0), (0, dp - d))),
    )


def cluster_model_forward(x, params, *, tile_n=512):
    n, d = x.shape
    assert d == params["d"]
    dp, kp, hp, k = params["dp"], params["kp"], params["hp"], params["k"]

    tile_n = _round_up(min(tile_n, _round_up(n, 8)), 8)
    np_ = _round_up(n, tile_n)
    num_tiles = np_ // tile_n
    f32 = jnp.float32

    x32 = x if x.dtype == f32 else x.astype(f32)
    # skip the extra HBM pad copy when x is already tile/lane aligned
    xp = x32 if (np_ == n and dp == d) else jnp.pad(x32, ((0, np_ - n), (0, dp - d)))

    # explicit VMEM budget: streamed f32 tiles double-buffered, bf16 invariants single
    est = (2 * 4 * tile_n * (2 * dp + kp)              # x, q, recon tiles (x2 buffers)
           + 2 * 4 * 8 * (kp + 128)                    # per-tile partial outputs
           + 2 * (kp * dp + dp * hp + hp * dp)         # bf16 centers / W1 / W2
           + 4 * (2 * kp + hp + dp))                   # c_sq, b1, b2, f
    vmem_limit = None if est <= 16 * 2 ** 20 else min(2 * est, 64 * 2 ** 20)
    cparams = pltpu.CompilerParams(dimension_semantics=("parallel",),
                                   vmem_limit_bytes=vmem_limit)

    # ---- pass 1: q, recon, per-tile column sums of q, per-tile MSE partials ----
    q_pad, recon_pad, f_parts, mse_parts = pl.pallas_call(
        functools.partial(_assign_decode_kernel, n_rows=n, n_features=d, tile_n=tile_n),
        out_shape=(
            jax.ShapeDtypeStruct((np_, kp), f32),
            jax.ShapeDtypeStruct((np_, dp), f32),
            jax.ShapeDtypeStruct((num_tiles, 8, kp), f32),
            jax.ShapeDtypeStruct((num_tiles, 8, 128), f32),
        ),
        grid=(num_tiles,),
        in_specs=[
            pl.BlockSpec((tile_n, dp), lambda i: (i, 0)),      # x tile (streamed, f32)
            _invariant_spec((kp, dp), lambda i: (0, 0)),       # centers (bf16, resident)
            _invariant_spec((1, kp), lambda i: (0, 0)),        # ||mu||^2 (+1e30 pad mask)
            _invariant_spec((dp, hp), lambda i: (0, 0)),       # W1 (bf16, resident)
            _invariant_spec((1, hp), lambda i: (0, 0)),        # b1
            _invariant_spec((hp, dp), lambda i: (0, 0)),       # W2 (bf16, resident)
            _invariant_spec((1, dp), lambda i: (0, 0)),        # b2
        ],
        out_specs=(
            pl.BlockSpec((tile_n, kp), lambda i: (i, 0)),      # q (lane-dense Kp)
            pl.BlockSpec((tile_n, dp), lambda i: (i, 0)),      # recon (lane-dense Dp)
            pl.BlockSpec((1, 8, kp), lambda i: (i, 0, 0)),     # per-tile column sums of q
            pl.BlockSpec((1, 8, 128), lambda i: (i, 0, 0)),    # per-tile MSE partial
        ),
        compiler_params=cparams,
    )(xp, params["c"], params["c_sq"], params["w1"], params["b1"],
      params["w2"], params["b2"])

    # whole-batch soft cluster frequencies f (tiny cross-tile reduction)
    f = jnp.sum(f_parts[:, 0, :], axis=0, keepdims=True)       # [1, Kp]

    # ---- pass 2: sharpened target P and KL(P||Q) — only term that needs whole-batch f ----
    kl_parts = pl.pallas_call(
        functools.partial(_kl_kernel, n_rows=n, tile_n=tile_n),
        out_shape=jax.ShapeDtypeStruct((num_tiles, 8, 128), f32),
        grid=(num_tiles,),
        in_specs=[
            pl.BlockSpec((tile_n, kp), lambda i: (i, 0)),      # q tile (streamed)
            _invariant_spec((1, kp), lambda i: (0, 0)),        # f (resident)
        ],
        out_specs=pl.BlockSpec((1, 8, 128), lambda i: (i, 0, 0)),
        compiler_params=cparams,
    )(q_pad, f)

    loss = jnp.sum(mse_parts[:, 0, 0]) + jnp.sum(kl_parts[:, 0, 0])
    q_out = q_pad if (np_ == n and kp == k) else q_pad[:n, :k]
    recon_out = recon_pad if (np_ == n and dp == d) else recon_pad[:n, :d]
    return q_out, recon_out, loss


if __name__ == "__main__":
    # Small DEC-style shapes; N chosen so batch padding / row masking is exercised.
    N, D, K, H = 20, 32, 8, 16

    key = jax.random.PRNGKey(0)
    kx, kc, k1, k2 = jax.random.split(key, 4)
    x = jax.random.normal(kx, (N, D), dtype=jnp.float32)
    centers = jax.random.normal(kc, (K, D), dtype=jnp.float32)
    w1 = jax.random.normal(k1, (D, H), dtype=jnp.float32) * (1.0 / jnp.sqrt(D))
    b1 = jnp.zeros((1, H), dtype=jnp.float32)
    w2 = jax.random.normal(k2, (H, D), dtype=jnp.float32) * (1.0 / jnp.sqrt(H))
    b2 = jnp.zeros((1, D), dtype=jnp.float32)

    params = prepare_cluster_params(centers, w1, b1, w2, b2)
    # tile_n=8 -> 3 batch tiles (one partially padded): exercises the parallel grid axis,
    # the cross-tile reduction of f, and the row masking.
    q, recon, loss = cluster_model_forward(x, params, tile_n=8)
    jax.block_until_ready((q, recon, loss))

    # Pure-JAX reference; matmul_dtype lets us mirror the kernel's bf16 MXU operands.
    def reference(x, c, w1, b1, w2, b2, matmul_dtype):
        f32 = jnp.float32
        xm, cm = x.astype(matmul_dtype), c.astype(matmul_dtype)
        xc = jnp.dot(xm, cm.T, preferred_element_type=f32).astype(f32)
        d2 = jnp.maximum(jnp.sum(x * x, -1, keepdims=True)
                         + jnp.sum(c * c, -1)[None, :] - 2.0 * xc, 0.0)
        q_un = 1.0 / (1.0 + d2)
        qr = q_un / jnp.sum(q_un, -1, keepdims=True)
        fr = jnp.sum(qr, axis=0, keepdims=True)
        p_un = qr * qr / fr
        p = p_un / jnp.sum(p_un, -1, keepdims=True)
        eps = 1e-8
        kl = jnp.sum(p * (jnp.log(p + eps) - jnp.log(qr + eps))) / x.shape[0]
        hh = jnp.maximum(
            jnp.dot(xm, w1.astype(matmul_dtype), preferred_element_type=f32).astype(f32)
            + b1, 0.0)
        rec = jnp.dot(hh.astype(matmul_dtype), w2.astype(matmul_dtype),
                      preferred_element_type=f32).astype(f32) + b2
        mse = jnp.mean((rec - x) ** 2)
        return qr, rec, kl + mse

    # q rows must sum to 1 (Newton-refined normalizer -> ~1e-6 residual)
    assert jnp.allclose(jnp.sum(q, axis=-1), 1.0, atol=1e-3)
    assert bool(jnp.isfinite(loss))

    # Tight check vs a reference that mirrors the kernel's bf16 matmul operands.
    q_b, rec_b, loss_b = reference(x, centers, w1, b1, w2, b2, jnp.bfloat16)
    assert jnp.allclose(q, q_b, atol=2e-3)
    assert jnp.allclose(recon, rec_b, atol=2e-3, rtol=2e-3)
    assert jnp.allclose(loss, loss_b, atol=2e-3, rtol=2e-3)

    # Looser check vs the all-f32 (PyTorch-faithful) math; the only delta is the
    # bf16 MXU operands.
    q_f, rec_f, loss_f = reference(x, centers, w1, b1, w2, b2, jnp.float32)
    assert jnp.allclose(q, q_f, atol=5e-3)
    assert jnp.allclose(recon, rec_f, atol=2e-2, rtol=2e-2)
    assert jnp.allclose(loss, loss_f, rtol=2e-2, atol=5e-3)

    print("KERNEL_OK")
</pallas_src>

<mosaic_0001>
module attributes {stable_mosaic.version = 11 : i64} {
  func.func @_assign_decode_kernel(%arg0: i32, %arg1: memref<8x128xf32, #tpu.memory_space<vmem>>, %arg2: memref<128x128xbf16, #tpu.memory_space<vmem>>, %arg3: memref<1x128xf32, #tpu.memory_space<vmem>>, %arg4: memref<128x128xbf16, #tpu.memory_space<vmem>>, %arg5: memref<1x128xf32, #tpu.memory_space<vmem>>, %arg6: memref<128x128xbf16, #tpu.memory_space<vmem>>, %arg7: memref<1x128xf32, #tpu.memory_space<vmem>>, %arg8: memref<8x128xf32, #tpu.memory_space<vmem>>, %arg9: memref<8x128xf32, #tpu.memory_space<vmem>>, %arg10: memref<1x8x128xf32, #tpu.memory_space<vmem>>, %arg11: memref<1x8x128xf32, #tpu.memory_space<vmem>>) attributes {dimension_semantics = [#tpu.dimension_semantics<parallel>], iteration_bounds = array<i64: 3>, scalar_prefetch = 0 : i64, scratch_operands = 0 : i64, tpu.core_type = #tpu.core_type<tc>, window_params = [{transform_indices = @transform_0, window_bounds = array<i64: 8, 128>}, {pipeline_mode = #tpu.pipeline_mode<synchronous>, transform_indices = @transform_1, window_bounds = array<i64: 128, 128>}, {pipeline_mode = #tpu.pipeline_mode<synchronous>, transform_indices = @transform_2, window_bounds = array<i64: 1, 128>}, {pipeline_mode = #tpu.pipeline_mode<synchronous>, transform_indices = @transform_3, window_bounds = array<i64: 128, 128>}, {pipeline_mode = #tpu.pipeline_mode<synchronous>, transform_indices = @transform_4, window_bounds = array<i64: 1, 128>}, {pipeline_mode = #tpu.pipeline_mode<synchronous>, transform_indices = @transform_5, window_bounds = array<i64: 128, 128>}, {pipeline_mode = #tpu.pipeline_mode<synchronous>, transform_indices = @transform_6, window_bounds = array<i64: 1, 128>}, {transform_indices = @transform_7, window_bounds = array<i64: 8, 128>}, {transform_indices = @transform_8, window_bounds = array<i64: 8, 128>}, {transform_indices = @transform_9, window_bounds = array<i64: 1, 8, 128>}, {transform_indices = @transform_10, window_bounds = array<i64: 1, 8, 128>}]} {
    %c0 = arith.constant 0 : index
    %c0_0 = arith.constant 0 : index
    %0 = vector.load %arg1[%c0, %c0_0] : memref<8x128xf32, #tpu.memory_space<vmem>>, vector<8x128xf32>
    %1 = arith.truncf %0 : vector<8x128xf32> to vector<8x128xbf16>
    %2 = arith.mulf %0, %0 : vector<8x128xf32>
    %cst = arith.constant dense<0.000000e+00> : vector<8xf32>
    %3 = vector.multi_reduction <add>, %2, %cst [1] : vector<8x128xf32> to vector<8xf32>
    %4 = vector.shape_cast %3 : vector<8xf32> to vector<8x1xf32>
    %c0_1 = arith.constant 0 : index
    %c0_2 = arith.constant 0 : index
    %5 = vector.load %arg2[%c0_1, %c0_2] : memref<128x128xbf16, #tpu.memory_space<vmem>>, vector<128x128xbf16>
    %cst_3 = arith.constant dense<0.000000e+00> : vector<8x128xf32>
    %6 = tpu.matmul %1, %5, %cst_3 {dimension_numbers = #tpu.dot_dimension_numbers<[1], [1], [0], [0], [0, 0, 1, 0], [], []>} : vector<8x128xbf16>, vector<128x128xbf16>, vector<8x128xf32> -> vector<8x128xf32>
    %c0_4 = arith.constant 0 : index
    %c0_5 = arith.constant 0 : index
    %7 = vector.load %arg3[%c0_4, %c0_5] : memref<1x128xf32, #tpu.memory_space<vmem>>, vector<1x128xf32>
    %8 = vector.broadcast %4 : vector<8x1xf32> to vector<8x128xf32>
    %9 = vector.broadcast %7 : vector<1x128xf32> to vector<8x128xf32>
    %10 = arith.addf %8, %9 : vector<8x128xf32>
    %cst_6 = arith.constant 2.000000e+00 : f32
    %11 = vector.broadcast %cst_6 : f32 to vector<8x128xf32>
    %12 = arith.mulf %11, %6 : vector<8x128xf32>
    %13 = arith.subf %10, %12 : vector<8x128xf32>
    %cst_7 = arith.constant 0.000000e+00 : f32
    %14 = vector.broadcast %cst_7 : f32 to vector<8x128xf32>
    %15 = arith.maximumf %13, %14 : vector<8x128xf32>
    %cst_8 = arith.constant 1.000000e+00 : f32
    %16 = vector.broadcast %cst_8 : f32 to vector<8x128xf32>
    %17 = arith.addf %16, %15 : vector<8x128xf32>
    %cst_9 = arith.constant 1.000000e+00 : f32
    %18 = vector.broadcast %cst_9 : f32 to vector<8x128xf32>
    %19 = arith.divf %18, %17 : vector<8x128xf32>
    %cst_10 = arith.constant dense<0.000000e+00> : vector<8xf32>
    %20 = vector.multi_reduction <add>, %19, %cst_10 [1] : vector<8x128xf32> to vector<8xf32>
    %21 = vector.shape_cast %20 : vector<8xf32> to vector<8x1xf32>
    %22 = tpu.reciprocal %21 {approx = true} : vector<8x1xf32> -> vector<8x1xf32>
    %23 = arith.mulf %21, %22 : vector<8x1xf32>
    %cst_11 = arith.constant 2.000000e+00 : f32
    %24 = vector.broadcast %cst_11 : f32 to vector<8x1xf32>
    %25 = arith.subf %24, %23 : vector<8x1xf32>
    %26 = arith.mulf %22, %25 : vector<8x1xf32>
    %27 = vector.broadcast %26 : vector<8x1xf32> to vector<8x128xf32>
    %28 = arith.mulf %19, %27 : vector<8x128xf32>
    %c0_12 = arith.constant 0 : index
    %c0_13 = arith.constant 0 : index
    %29 = vector.load %arg8[%c0_12, %c0_13] : memref<8x128xf32, #tpu.memory_space<vmem>>, vector<8x128xf32>
    tpu.vector_store %arg8[%c0_12, %c0_13], %28 {strides = array<i32>} : memref<8x128xf32, #tpu.memory_space<vmem>>, vector<8x128xf32>,
    %30 = tpu.iota {dimensions = array<i32: 0>} : vector<8x1xi32>
    %c8_i32 = arith.constant 8 : i32
    %31 = arith.muli %arg0, %c8_i32 : i32
    %32 = vector.broadcast %31 : i32 to vector<8x1xi32>
    %33 = arith.addi %30, %32 : vector<8x1xi32>
    %c20_i32 = arith.constant 20 : i32
    %34 = vector.broadcast %c20_i32 : i32 to vector<8x1xi32>
    %35 = arith.cmpi slt, %33, %34 : vector<8x1xi32>
    %36 = arith.extui %35 : vector<8x1xi1> to vector<8x1xi32>
    %37 = arith.sitofp %36 : vector<8x1xi32> to vector<8x1xf32>
    %38 = vector.broadcast %37 : vector<8x1xf32> to vector<8x128xf32>
    %39 = arith.mulf %28, %38 : vector<8x128xf32>
    %cst_14 = arith.constant dense<0.000000e+00> : vector<128xf32>
    %40 = vector.multi_reduction <add>, %39, %cst_14 [0] : vector<8x128xf32> to vector<128xf32>
    %41 = vector.shape_cast %40 : vector<128xf32> to vector<1x128xf32>
    %42 = vector.shape_cast %41 : vector<1x128xf32> to vector<1x1x128xf32>
    %43 = vector.shape_cast %42 : vector<1x1x128xf32> to vector<1x1x128xf32>
    %44 = vector.broadcast %43 : vector<1x1x128xf32> to vector<1x8x128xf32>
    %c0_15 = arith.constant 0 : index
    %c0_16 = arith.constant 0 : index
    %c0_17 = arith.constant 0 : index
    %45 = vector.load %arg10[%c0_15, %c0_16, %c0_17] : memref<1x8x128xf32, #tpu.memory_space<vmem>>, vector<1x8x128xf32>
    tpu.vector_store %arg10[%c0_15, %c0_16, %c0_17], %44 {strides = array<i32>} : memref<1x8x128xf32, #tpu.memory_space<vmem>>, vector<1x8x128xf32>,
    %c0_18 = arith.constant 0 : index
    %c0_19 = arith.constant 0 : index
    %46 = vector.load %arg4[%c0_18, %c0_19] : memref<128x128xbf16, #tpu.memory_space<vmem>>, vector<128x128xbf16>
    %cst_20 = arith.constant dense<0.000000e+00> : vector<8x128xf32>
    %47 = tpu.matmul %1, %46, %cst_20 {dimension_numbers = #tpu.dot_dimension_numbers<[1], [0], [0], [1], [0, 0, 1, 1], [], []>} : vector<8x128xbf16>, vector<128x128xbf16>, vector<8x128xf32> -> vector<8x128xf32>
    %c0_21 = arith.constant 0 : index
    %c0_22 = arith.constant 0 : index
    %48 = vector.load %arg5[%c0_21, %c0_22] : memref<1x128xf32, #tpu.memory_space<vmem>>, vector<1x128xf32>
    %49 = vector.broadcast %48 : vector<1x128xf32> to vector<8x128xf32>
    %50 = arith.addf %47, %49 : vector<8x128xf32>
    %cst_23 = arith.constant 0.000000e+00 : f32
    %51 = vector.broadcast %cst_23 : f32 to vector<8x128xf32>
    %52 = arith.maximumf %50, %51 : vector<8x128xf32>
    %53 = arith.truncf %52 : vector<8x128xf32> to vector<8x128xbf16>
    %c0_24 = arith.constant 0 : index
    %c0_25 = arith.constant 0 : index
    %54 = vector.load %arg6[%c0_24, %c0_25] : memref<128x128xbf16, #tpu.memory_space<vmem>>, vector<128x128xbf16>
    %cst_26 = arith.constant dense<0.000000e+00> : vector<8x128xf32>
    %55 = tpu.matmul %53, %54, %cst_26 {dimension_numbers = #tpu.dot_dimension_numbers<[1], [0], [0], [1], [0, 0, 1, 1], [], []>} : vector<8x128xbf16>, vector<128x128xbf16>, vector<8x128xf32> -> vector<8x128xf32>
    %c0_27 = arith.constant 0 : index
    %c0_28 = arith.constant 0 : index
    %56 = vector.load %arg7[%c0_27, %c0_28] : memref<1x128xf32, #tpu.memory_space<vmem>>, vector<1x128xf32>
    %57 = vector.broadcast %56 : vector<1x128xf32> to vector<8x128xf32>
    %58 = arith.addf %55, %57 : vector<8x128xf32>
    %c0_29 = arith.constant 0 : index
    %c0_30 = arith.constant 0 : index
    %59 = vector.load %arg9[%c0_29, %c0_30] : memref<8x128xf32, #tpu.memory_space<vmem>>, vector<8x128xf32>
    tpu.vector_store %arg9[%c0_29, %c0_30], %58 {strides = array<i32>} : memref<8x128xf32, #tpu.memory_space<vmem>>, vector<8x128xf32>,
    %60 = arith.subf %58, %0 : vector<8x128xf32>
    %61 = vector.broadcast %37 : vector<8x1xf32> to vector<8x128xf32>
    %62 = arith.mulf %60, %61 : vector<8x128xf32>
    %63 = arith.mulf %62, %62 : vector<8x128xf32>
    %64 = vector.shape_cast %63 : vector<8x128xf32> to vector<1x8x128xf32>
    %cst_31 = arith.constant dense<0.000000e+00> : vector<1xf32>
    %65 = vector.multi_reduction <add>, %64, %cst_31 [1, 2] : vector<1x8x128xf32> to vector<1xf32>
    %66 = vector.shape_cast %65 : vector<1xf32> to vector<1x1x1xf32>
    %67 = vector.extract %66[0, 0, 0] : f32 from vector<1x1x1xf32>
    %cst_32 = arith.constant 1.562500e-03 : f32
    %68 = arith.mulf %67, %cst_32 : f32
    %69 = vector.broadcast %68 : f32 to vector<1x8x128xf32>
    %c0_33 = arith.constant 0 : index
    %c0_34 = arith.constant 0 : index
    %c0_35 = arith.constant 0 : index
    %70 = vector.load %arg11[%c0_33, %c0_34, %c0_35] : memref<1x8x128xf32, #tpu.memory_space<vmem>>, vector<1x8x128xf32>
    tpu.vector_store %arg11[%c0_33, %c0_34, %c0_35], %69 {strides = array<i32>} : memref<1x8x128xf32, #tpu.memory_space<vmem>>, vector<1x8x128xf32>,
    return
  }
  func.func @transform_0(%arg0: i32) -> (i32, i32) {
    %c0_i32 = arith.constant 0 : i32
    %c0_i32_0 = arith.constant 0 : i32
    return %arg0, %c0_i32 : i32, i32
  }
  func.func @transform_1(%arg0: i32) -> (i32, i32) {
    %c0_i32 = arith.constant 0 : i32
    %c0_i32_0 = arith.constant 0 : i32
    %c0_i32_1 = arith.constant 0 : i32
    return %c0_i32, %c0_i32_0 : i32, i32
  }
  func.func @transform_2(%arg0: i32) -> (i32, i32) {
    %c0_i32 = arith.constant 0 : i32
    %c0_i32_0 = arith.constant 0 : i32
    %c0_i32_1 = arith.constant 0 : i32
    return %c0_i32, %c0_i32_0 : i32, i32
  }
  func.func @transform_3(%arg0: i32) -> (i32, i32) {
    %c0_i32 = arith.constant 0 : i32
    %c0_i32_0 = arith.constant 0 : i32
    %c0_i32_1 = arith.constant 0 : i32
    return %c0_i32, %c0_i32_0 : i32, i32
  }
  func.func @transform_4(%arg0: i32) -> (i32, i32) {
    %c0_i32 = arith.constant 0 : i32
    %c0_i32_0 = arith.constant 0 : i32
    %c0_i32_1 = arith.constant 0 : i32
    return %c0_i32, %c0_i32_0 : i32, i32
  }
  func.func @transform_5(%arg0: i32) -> (i32, i32) {
    %c0_i32 = arith.constant 0 : i32
    %c0_i32_0 = arith.constant 0 : i32
    %c0_i32_1 = arith.constant 0 : i32
    return %c0_i32, %c0_i32_0 : i32, i32
  }
  func.func @transform_6(%arg0: i32) -> (i32, i32) {
    %c0_i32 = arith.constant 0 : i32
    %c0_i32_0 = arith.constant 0 : i32
    %c0_i32_1 = arith.constant 0 : i32
    return %c0_i32, %c0_i32_0 : i32, i32
  }
  func.func @transform_7(%arg0: i32) -> (i32, i32) {
    %c0_i32 = arith.constant 0 : i32
    %c0_i32_0 = arith.constant 0 : i32
    return %arg0, %c0_i32 : i32, i32
  }
  func.func @transform_8(%arg0: i32) -> (i32, i32) {
    %c0_i32 = arith.constant 0 : i32
    %c0_i32_0 = arith.constant 0 : i32
    return %arg0, %c0_i32 : i32, i32
  }
  func.func @transform_9(%arg0: i32) -> (i32, i32, i32) {
    %c0_i32 = arith.constant 0 : i32
    %c0_i32_0 = arith.constant 0 : i32
    %c0_i32_1 = arith.constant 0 : i32
    return %arg0, %c0_i32, %c0_i32_0 : i32, i32, i32
  }
  func.func @transform_10(%arg0: i32) -> (i32, i32, i32) {
    %c0_i32 = arith.constant 0 : i32
    %c0_i32_0 = arith.constant 0 : i32
    %c0_i32_1 = arith.constant 0 : i32
    return %arg0, %c0_i32, %c0_i32_0 : i32, i32, i32
  }
}

</mosaic_0001>

<bundles_post_ra>
// kernel: tpu_custom_call.1
= control target key start
LH: loop header
LB: loop body
LE: loop exit
PB: predicated region body
PF: predicated region fallthrough
CT: control target
= control target key end

     0   :  { %s2125_s0 = inlined_call_operand.hbm [shape: f32[24,128], index: 0, kind: input, shape index: {}]   ;;  %s2126_s1 = inlined_call_operand.hbm [shape: bf16[128,128], index: 1, kind: input, shape index: {}]   ;;  %s2127_s2 = inlined_call_operand.vmem [shape: f32[1,128], index: 2, kind: input, shape index: {}]   ;;  %s2128_s3 = inlined_call_operand.hbm [shape: bf16[128,128], index: 3, kind: input, shape index: {}]   ;;  %s2129_s4 = inlined_call_operand.vmem [shape: f32[1,128], index: 4, kind: input, shape index: {}]   ;;  %s2130_s5 = inlined_call_operand.hbm [shape: bf16[128,128], index: 5, kind: input, shape index: {}]   ;;  %s2131_s6 = inlined_call_operand.vmem [shape: f32[1,128], index: 6, kind: input, shape index: {}]   ;;  %s2132_s7 = inlined_call_operand.hbm [shape: f32[24,128], index: 7, kind: output, shape index: {0}]   ;;  %s2133_s8 = inlined_call_operand.hbm [shape: f32[24,128], index: 8, kind: output, shape index: {1}]   ;;  %s2134_s9 = inlined_call_operand.hbm [shape: f32[3,8,128], index: 9, kind: output, shape index: {2}]   ;;  %s2135_s10 = inlined_call_operand.hbm [shape: f32[3,8,128], index: 10, kind: output, shape index: {3}]  }
   0x1   :  { %2145 = sst [smem:[#allocation24_spill]] %s2125_s0 }
   0x2   :  { %2146 = sst [smem:[#allocation25_spill]] %s2134_s9 }
   0x3   :  { %2147 = sst [smem:[#allocation26_spill]] %s2135_s10 }
   0x4   :  { %16 = vsyncpa [#allocation3], 0 }
   0x5   :  { %18 = vsyncpa [#allocation3 + $0x1], 0 }
   0x6   :  { %19 = vsyncpa [#allocation6], 0 }
   0x7   :  { %20 = vsyncpa [#allocation9], 0 }
   0x8   :  { %21 = vsyncpa [#allocation4], 0 }
   0x9   :  { %23 = vsyncpa [#allocation4 + $0x1], 0 }
   0xa   :  { %24 = vsyncpa [#allocation12], 0 }
   0xb   :  { %26 = vsyncpa [#allocation12 + $0x1], 0 }
   0xc   :  { %27 = vsyncpa [#allocation15], 0 }
   0xd   :  { %29 = vsyncpa [#allocation15 + $0x1], 0  ;;  %s1713_s13 = smov 0   ;;  %s1715_s14 = smov 0  }
   0xe   :  { %s1717_s15 = smov 0   ;;  %s1719_s16 = smov 0  }
   0xf LB: > { %2148 = sst [smem:[#allocation22_spill]] %s1632_s13  ;;  %s1734_s17 = sadd.s32 4294967295, %s1644_s16   ;;  %s1644_s16 = sphi %s1719_s16, %s2176_s16   ;;  %s1640_s15 = sphi %s1717_s15, %s2175_s15   ;;  %s1636_s14 = sphi %s1715_s14, %s2174_s14   ;;  %s1632_s13 = sphi %s1713_s13, %s2173_s13  }
  0x10   : > { %s2136_s18 = sadd.s32 4294967294, %s1644_s16   ;;  %p55_p0 = scmp.ne.s32.totalorder %s1636_s14, %s1632_s13 }
  0x11   : > { %p2137_p1 = scmp.eq.s32.totalorder %s1734_s17, 0  ;;  %p211_p3 = scmp.eq.s32.totalorder %s2136_s18, 2 }
  0x12   : > { %p1096_p5 = scmp.ge.s32.totalorder %s1644_s16, 1  ;;  %p296_p7 = scmp.lt.s32.totalorder %s1644_s16, 4 }
  0x13   : > { %p1745_p4 = por %p2137_p1, %p55_p0  ;;  %p1750_p6 = por %p211_p3, %p55_p0 }
  0x14   : > { %p1755_p8 = pnand %p1096_p5, %p296_p7  ;;  %s1646_s22 = smov [#allocation5]  }
  0x15   : > { %s2149_s19 = scalar_select %p1745_p4, 1, 0 }
  0x16   : > { %s2150_s20 = scalar_select %p1750_p6, 1, 0 }
  0x17   : > { %s2152_s21 = scalar_select %p1755_p8, 1, 0 }
  0x18   : > { %2151 = sst [smem:[#allocation23_spill]] %s2150_s20  ;;  %s308_s23 = sshll.u32 %s1646_s22, 4  ;;  %s1759_s23 = int_to_ptr.vmem [resolvable:$true] %s308_s23 }
  0x19   : > { %p1262_p9 = pneg %p1755_p8  ;;  %s1647_s25 = smov [#allocation7]  }
  0x1a   : > { %s324_s26 = sshll.u32 %s1647_s25, 4  ;;  %s1648_s27 = smov [#allocation8]   ;;  %s1769_s26 = int_to_ptr.vmem [resolvable:$true] %s324_s26 }
  0x1b   : > { %p1765_p10 = pnand %p1262_p9, %p2137_p1  ;;  %s1771_s28 = sshll.u32 %s1648_s27, 4  ;;  %s341_s28 = int_to_ptr.vmem [resolvable:$true] %s1771_s28 }
  0x1c   : > { %s1364_s11 = scalar_lea.hbm %s2126_s1, 1024 }
  0x1d   : > { %p1365_p11 = scmp.ne.s32.totalorder %s2126_s1, %s1364_s11  ;;  %p1781_p12 = pneg %p1765_p10 }
  0x1e   : > { %p1371_p3 = scmp.lt.u32.totalorder %s1364_s11, %s2126_s1 }
  0x1f   : > { %p1367_p13 = pnand %p1781_p12, %p1365_p11 }
  0x21   : > { %p1368_p0 = pneg %p1367_p13 }
  0x23   : > { %p1373_p5 = pnand %p1371_p3, %p1368_p0 }
  0x25   : > { %1376 = shalt.err (!%p1373_p5)
}
  0x26   : > { %s1377_s29 = scalar_lea.vmem %s1759_s23, 1024  ;;  %p1385_p2 = scmp.lt.s32.totalorder %s1759_s23, %s1759_s23 }
  0x27   : > { %p1378_p7 = scmp.ne.s32.totalorder %s1759_s23, %s1377_s29  ;;  %p1386_p6 = scmp.lt.s32.totalorder %s1377_s29, %s1377_s29 }
  0x29   : > { %p1380_p9 = pnand %p1378_p7, %p1781_p12  ;;  %p1387_p11 = por %p1386_p6, %p1385_p2 }
  0x2b   : > { %p1381_p1 = pneg %p1380_p9 }
  0x2d   : > { %p1388_p13 = pnand %p1387_p11, %p1381_p1 }
  0x2f   : > { %1391 = shalt.err (!%p1388_p13)
}
  0x30   : > { %s1649_s30 = smov 64   ;;  %s1650_s11 = smov 4  }
  0x31   : > { %1265 = dma.hbm_to_vmem [thread:$0]  (!%p1765_p10), %s2126_s1, 1024, %s1759_s23, [#allocation6], %s1649_s30, %s1649_s30, %s1650_s11  }
  0x32   : > { %s1392_s29 = scalar_lea.hbm %s2128_s3, 1024 }
  0x33   : > { %p1393_p1 = scmp.ne.s32.totalorder %s2128_s3, %s1392_s29  ;;  %p1399_p0 = scmp.lt.u32.totalorder %s1392_s29, %s2128_s3 }
  0x35   : > { %p1395_p2 = pnand %p1393_p1, %p1781_p12 }
  0x37   : > { %p1396_p6 = pneg %p1395_p2 }
  0x39   : > { %p1401_p3 = pnand %p1399_p0, %p1396_p6 }
  0x3b   : > { %1404 = shalt.err (!%p1401_p3)
}
  0x3c   : > { %s1405_s23 = scalar_lea.vmem %s1769_s26, 1024  ;;  %p1413_p11 = scmp.lt.s32.totalorder %s1769_s26, %s1769_s26 }
  0x3d   : > { %p1406_p5 = scmp.ne.s32.totalorder %s1769_s26, %s1405_s23  ;;  %p1414_p13 = scmp.lt.s32.totalorder %s1405_s23, %s1405_s23 }
  0x3f   : > { %p1408_p7 = pnand %p1406_p5, %p1781_p12  ;;  %p1415_p1 = por %p1414_p13, %p1413_p11 }
  0x41   : > { %p1409_p9 = pneg %p1408_p7 }
  0x43   : > { %p1416_p2 = pnand %p1415_p1, %p1409_p9 }
  0x45   : > { %1419 = shalt.err (!%p1416_p2)
}
  0x46   : > { %1268 = dma.hbm_to_vmem [thread:$0]  (!%p1765_p10), %s2128_s3, 1024, %s1769_s26, [#allocation6], %s1649_s30, %s1649_s30, %s1650_s11  }
  0x47   : > { %s1420_s12 = scalar_lea.hbm %s2130_s5, 1024 }
  0x48   : > { %p1421_p6 = scmp.ne.s32.totalorder %s2130_s5, %s1420_s12  ;;  %p1427_p5 = scmp.lt.u32.totalorder %s1420_s12, %s2130_s5 }
  0x4a   : > { %p1423_p0 = pnand %p1421_p6, %p1781_p12 }
  0x4c   : > { %p1424_p3 = pneg %p1423_p0 }
  0x4e   : > { %p1429_p7 = pnand %p1427_p5, %p1424_p3 }
  0x50   : > { %1432 = shalt.err (!%p1429_p7)
}
  0x51   : > { %s1433_s23 = scalar_lea.vmem %s341_s28, 1024  ;;  %p1441_p1 = scmp.lt.s32.totalorder %s341_s28, %s341_s28 }
  0x52   : > { %p1434_p9 = scmp.ne.s32.totalorder %s341_s28, %s1433_s23  ;;  %p1442_p2 = scmp.lt.s32.totalorder %s1433_s23, %s1433_s23 }
  0x54   : > { %p1436_p11 = pnand %p1434_p9, %p1781_p12  ;;  %p1443_p4 = por %p1442_p2, %p1441_p1 }
  0x56   : > { %p1437_p13 = pneg %p1436_p11 }
  0x58   : > { %p1444_p8 = pnand %p1443_p4, %p1437_p13 }
  0x5a   : > { %1447 = shalt.err (!%p1444_p8)
}
  0x5b   : > { %1271 = dma.hbm_to_vmem [thread:$0]  (!%p1765_p10), %s2130_s5, 1024, %s341_s28, [#allocation9], %s1649_s30, %s1649_s30, %s1650_s11  }
  0x5c   : > { %s1854_s18 = sadd.s32 1, %s1644_s16   ;;  %s42_s10 = sadd.s32 1, %s1640_s15 }
  0x5d   : > { %s39_s24 = ssub.s32 %s1644_s16, %s1854_s18  ;;  %p49_p8 = scmp.ne.s32.totalorder %s1640_s15, %s1636_s14 }
  0x5e   : > { %p40_p4 = scmp.eq.s32.totalorder %s39_s24, 0  ;;  %p50_p12 = scmp.eq.s32.totalorder %s1644_s16, 0 }
  0x5f   : > { %p1292_p6 = scmp.lt.s32.totalorder %s1644_s16, 3  ;;  %p2155_p3 = scmp.eq.s32.totalorder %s1734_s17, 2 }
  0x60   : > { %s1864_s13 = scalar_select %p40_p4, %s1640_s15, %s42_s10  }
  0x61   : > { %p51_p0 = por %p50_p12, %p49_p8  ;;  %p1868_p5 = por %p2155_p3, %p49_p8 }
  0x62   : > { %s357_s12 = sand.u32 1, %s1640_s15   ;;  %s1102_s22 = sshll.u32 %s1644_s16, 7 }
  0x63   : > { %s1101_s28 = sshll.u32 %s357_s12, 3  ;;  %s2157_s0 = sld [smem:[#allocation24_spill]] }
  0x64   : > { %s361_s27 = scalar_lea.vmem [#allocation2], %s1101_s28  ;;  %p1879_p10 = pnand %p1292_p6, %p51_p0 }
  0x65   : > { %s368_s29 = sshll.u32 %s361_s27, 4  ;;  %s358_s26 = scalar_lea.sflag [#allocation3], %s357_s12  ;;  %s1883_s29 = int_to_ptr.vmem [resolvable:$true] %s368_s29 }
  0x66   : > { %p1450_p9 = pneg %p1879_p10 }
  0x69   : > { %s1877_s25 = scalar_lea.hbm %s2157_s0, %s1102_s22  ;;  %s1453_s22 = scalar_lea.hbm %s2157_s0, 384 }
  0x6a   : > { %s1448_s9 = scalar_lea.hbm %s1877_s25, 128  ;;  %p1454_p1 = scmp.lt.u32.totalorder %s1877_s25, %s2157_s0 }
  0x6b   : > { %p1449_p7 = scmp.ne.s32.totalorder %s1877_s25, %s1448_s9  ;;  %p1455_p2 = scmp.lt.u32.totalorder %s1453_s22, %s1448_s9 }
  0x6c   : > { %p1457_p8 = scmp.lt.u32.totalorder %s1448_s9, %s1877_s25 }
  0x6d   : > { %p1451_p11 = pnand %p1450_p9, %p1449_p7  ;;  %p1456_p4 = por %p1455_p2, %p1454_p1 }
  0x6f   : > { %p1452_p13 = pneg %p1451_p11  ;;  %p1458_p12 = por %p1457_p8, %p1456_p4 }
  0x71   : > { %p1459_p6 = pnand %p1458_p12, %p1452_p13 }
  0x73   : > { %1462 = shalt.err (!%p1459_p6)
}
  0x74   : > { %s1463_s12 = scalar_lea.vmem %s1883_s29, 128  ;;  %s1651_s11 = smov [#allocation2]  }
  0x75   : > { %p1464_p0 = scmp.ne.s32.totalorder %s1883_s29, %s1463_s12  ;;  %s1468_s27 = sshll.u32 %s1651_s11, 4  ;;  %s1469_s27 = int_to_ptr.vmem [resolvable:$false] %s1468_s27 }
  0x76   : > { %s1470_s24 = scalar_lea.vmem %s1469_s27, 256  ;;  %p1471_p11 = scmp.lt.s32.totalorder %s1883_s29, %s1469_s27 }
  0x77   : > { %p1466_p3 = pnand %p1464_p0, %p1450_p9  ;;  %p1472_p1 = scmp.lt.s32.totalorder %s1470_s24, %s1463_s12 }
  0x79   : > { %p1467_p7 = pneg %p1466_p3  ;;  %p1473_p2 = por %p1472_p1, %p1471_p11 }
  0x7b   : > { %p1474_p4 = pnand %p1473_p2, %p1467_p7 }
  0x7d   : > { %1477 = shalt.err (!%p1474_p4)
}
  0x7e   : > { %1275 = dma.hbm_to_vmem [thread:$0]  (!%p1879_p10), %s1877_s25, 128, %s1883_s29, %s358_s26  }
  0x7f   : > { %p2159_p13 = scmp.ne.s32.totalorder %s2152_s21, 0 }
  0x80   : > { %s1913_s9 = sand.u32 (!%p2159_p13), 1, %s1636_s14   ;;  %p2160_p9 = scmp.ne.s32.totalorder (!%p2159_p13), %s2149_s19, 0 }
  0x81   : > { %377 = sbr.rel (%p2159_p13) target bundleno = 837 (0x345), region = 48  ;;  %s1916_s10 = sshll.u32 (!%p2159_p13), %s1913_s9, 3 }
  0x82   : > { %s380_s22 = scalar_lea.sflag (!%p2159_p13), [#allocation3], %s1913_s9  ;;  %s383_s28 = scalar_lea.vmem (!%p2159_p13), [#allocation2], %s1916_s10 }
  0x88   : > { %1607 = dma.done.wait (%p2160_p9), %s380_s22, 128  }
  0x89   : > { %1609 = vsyncadd (%p2160_p9), %s380_s22, 4294967168  ;;  %p2161_p10 = scmp.eq.s32.totalorder %s1734_s17, 0 }
  0x8b   : > { %1611 = dma.done.wait (%p2161_p10), [#allocation6], 2048   ;;  %p2162_p8 = pmov %p2161_p10 }
  0x8d   : > { %1613 = vsyncadd (%p2162_p8), [#allocation6], 4294965248  ;;  %p2163_p12 = pmov %p2162_p8 }
  0x8e   : > { %p2164_p6 = pmov %p2162_p8 }
  0x8f   : > { %1615 = dma.done.wait (%p2163_p12), [#allocation9], 1024  }
  0x90   : > { %1617 = vsyncadd (%p2164_p6), [#allocation9], 4294966272  ;;  %v1652_v0 = vmov 0.0   ;;  %vm1653_vm0 = vmmov 0   ;;  %v1336_v1 = vld [vmem:[#allocation7] sm:$0xff]   ;;  %v1337_v2 = vld [vmem:[#allocation7 + $0x8] sm:$0xff]   ;;  %v579_v49 = vlaneseq }
  0x91   : > { %1198 = vmatprep.subr.bf16.mxu1 %v1652_v0  ;;  %1214 = vmatprep.mubr.msk.bf16.mxu1 %vm1653_vm0, %v1652_v0  ;;  %v1338_v3 = vld [vmem:[#allocation7 + $0x10] sm:$0xff]   ;;  %v1344_v5 = vld [vmem:[#allocation5] sm:$0xff]   ;;  %v1339_v7 = vld [vmem:[#allocation7 + $0x18] sm:$0xff]   ;;  %s1121_s23 = sshll.u32 %s1734_s17, 3  ;;  %s432_s12 = scalar_lea.vmem [#allocation11], %s1916_s10 }
  0x92   : > { %1178 = vmatprep.subr.bf16.mxu0 %v1652_v0  ;;  %1194 = vmatprep.mubr.msk.bf16.mxu0 %vm1653_vm0, %v1652_v0  ;;  %v1940_v4 = vld [vmem:[%s383_s28] sm:$0xff]  ;;  %v1340_v8 = vld [vmem:[#allocation7 + $0x20] sm:$0xff]   ;;  %v1345_v9 = vld [vmem:[#allocation5 + $0x8] sm:$0xff]   ;;  %v580_v50 = vshrl.u32 %v579_v49, 7  ;;  %v582_v51 = vstv %s1121_s23  ;;  %s425_s11 = scalar_lea.vmem [#allocation10], %s1916_s10  ;;  %s2144_s27 = scalar_lea.vmem [#allocation13], %s1916_s10 }
  0x93   : > { %1199 = vmatpush3.bf16.msra.mxu1 %v1336_v1  ;;  %v450_v6 = vmul.f32 %v1940_v4, %v1940_v4  ;;  %1179 = vmatpush3.bf16.xpose.msra.mxu0 %v1344_v5  ;;  %v1341_v10 = vld [vmem:[#allocation7 + $0x28] sm:$0xff]   ;;  %v1342_v11 = vld [vmem:[#allocation7 + $0x30] sm:$0xff]   ;;  %v1343_v13 = vld [vmem:[#allocation7 + $0x38] sm:$0xff]   ;;  %v449_v14 = vpack.c.bf16 %v1940_v4, %v1940_v4  ;;  %s840_s24 = sand.u32 1, %s1734_s17   ;;  %s1989_s22 = sshll.u32 %s1734_s17, 7 }
  0x94   : > { %1200 = vmatprep.subr.bf16.mxu1 %v1652_v0  ;;  %1180 = vmatprep.subr.bf16.mxu0 %v1652_v0  ;;  %v1346_v12 = vld [vmem:[#allocation5 + $0x10] sm:$0xff]   ;;  %v1352_v15 = vld [vmem:[#allocation8] sm:$0xff]   ;;  %v1347_v16 = vld [vmem:[#allocation5 + $0x18] sm:$0xff]   ;;  %v583_v53 = vadd.s32 %v582_v51, %v580_v50  ;;  %s1995_s21 = scalar_lea.hbm %s2133_s8, %s1989_s22  ;;  %s877_s25 = sshll.u32 %s432_s12, 4  ;;  %s878_s25 = int_to_ptr.vmem [resolvable:$true] %s877_s25 }
  0x95   : > { %451 = vadd.xlane.f32.xlu0 %v450_v6  ;;  %v1353_v17 = vld [vmem:[#allocation8 + $0x8] sm:$0xff]   ;;  %v1354_v18 = vld [vmem:[#allocation8 + $0x10] sm:$0xff]   ;;  %v1348_v19 = vld [vmem:[#allocation5 + $0x20] sm:$0xff]   ;;  %s1997_s29 = scalar_lea.sflag [#allocation12], %s840_s24  ;;  %s1478_s23 = scalar_lea.vmem %s878_s25, 128 }
  0x96   : > { %v1355_v20 = vld [vmem:[#allocation8 + $0x18] sm:$0xff]   ;;  %v1356_v21 = vld [vmem:[#allocation8 + $0x20] sm:$0xff]   ;;  %v1349_v22 = vld [vmem:[#allocation5 + $0x28] sm:$0xff]   ;;  %vm584_vm1 = vcmp.lt.s32.totalorder %v583_v53, 20  ;;  %p1479_p0 = scmp.ne.s32.totalorder %s878_s25, %s1478_s23  ;;  %s1654_s26 = smov [#allocation11]  }
  0x97   : > { %1201 = vmatpush3.bf16.msra.mxu1 %v1337_v2  ;;  %v1357_v23 = vld [vmem:[#allocation8 + $0x28] sm:$0xff]   ;;  %v1350_v24 = vld [vmem:[#allocation5 + $0x30] sm:$0xff]   ;;  %v1351_v25 = vld [vmem:[#allocation5 + $0x38] sm:$0xff]   ;;  %v1122_v62 = vsel %vm584_vm1, 1.0, %v1652_v0  ;;  %s1482_s30 = sshll.u32 %s1654_s26, 4  ;;  %s1483_s30 = int_to_ptr.vmem [resolvable:$false] %s1482_s30 }
  0x98   : > { %1202 = vmatprep.subr.bf16.mxu1 %v1652_v0  ;;  %v1358_v26 = vld [vmem:[#allocation8 + $0x30] sm:$0xff]   ;;  %v1359_v27 = vld [vmem:[#allocation8 + $0x38] sm:$0xff]   ;;  %p1480_p3 = pnand %p1479_p0, %p1868_p5  ;;  %s1484_s17 = scalar_lea.vmem %s1483_s30, 256 }
  0x99   : > { %v1123_v28 = vld [vmem:[%s2129_s4] ss:$0 sm:$0xff]  ;;  %p1485_p11 = scmp.lt.s32.totalorder %s878_s25, %s1483_s30  ;;  %p1486_p1 = scmp.lt.s32.totalorder %s1484_s17, %s1478_s23 }
  0x9a   : > { %v1120_v36 = vld [vmem:[%s2127_s2] ss:$0 sm:$0xff]  ;;  %p1481_p7 = pneg %p1480_p3 }
  0x9b   : > { %1203 = vmatpush3.bf16.msra.mxu1 %v1338_v3  ;;  %1181 = vmatpush3.bf16.xpose.msra.mxu0 %v1345_v9  ;;  %v1132_v55 = vld [vmem:[%s2131_s6] ss:$0 sm:$0xff]  ;;  %p1487_p2 = por %p1486_p1, %p1485_p11 }
  0x9c   : > { %1204 = vmatprep.subr.bf16.mxu1 %v1652_v0  ;;  %1182 = vmatprep.subr.bf16.mxu0 %v1652_v0 }
  0x9d   : > { %p1488_p4 = pnand %p1487_p2, %p1481_p7 }
  0x9f   : > { %1205 = vmatpush3.bf16.msra.mxu1 %v1339_v7 }
  0xa0   : > { %1206 = vmatprep.subr.bf16.mxu1 %v1652_v0 }
  0xa3   : > { %1207 = vmatpush3.bf16.msra.mxu1 %v1340_v8  ;;  %1183 = vmatpush3.bf16.xpose.msra.mxu0 %v1346_v12 }
  0xa4   : > { %1208 = vmatprep.subr.bf16.mxu1 %v1652_v0  ;;  %1184 = vmatprep.subr.bf16.mxu0 %v1652_v0 }
  0xa7   : > { %1209 = vmatpush3.bf16.msra.mxu1 %v1341_v10 }
  0xa8   : > { %1210 = vmatprep.subr.bf16.mxu1 %v1652_v0 }
  0xab   : > { %1211 = vmatpush3.bf16.msra.mxu1 %v1342_v11  ;;  %1185 = vmatpush3.bf16.xpose.msra.mxu0 %v1347_v16 }
  0xac   : > { %1212 = vmatprep.subr.bf16.mxu1 %v1652_v0  ;;  %1186 = vmatprep.subr.bf16.mxu0 %v1652_v0 }
  0xaf   : > { %1213 = vmatpush3.bf16.msra.mxu1 %v1343_v13 }
  0xb0   : > { %1218 = vmatprep.subr.bf16.mxu1 %v1652_v0 }
  0xb2   : > { %1215 = vmatmul.mubr.bf16.vlgmr.msra.gmra.mrb[0].mxu1 %v449_v14 }
  0xb3   : > { %1219 = vmatpush3.bf16.msra.mxu1 %v1352_v15  ;;  %1234 = vmatprep.mubr.msk.bf16.mxu1 %vm1653_vm0, %v1652_v0 }
  0xb4   : > { %1220 = vmatprep.subr.bf16.mxu1 %v1652_v0  ;;  %1187 = vmatpush3.bf16.xpose.msra.mxu0 %v1348_v19 }
  0xb5   : > { %1188 = vmatprep.subr.bf16.mxu0 %v1652_v0 }
  0xb7   : > { %1221 = vmatpush3.bf16.msra.mxu1 %v1353_v17 }
  0xb8   : > { %1222 = vmatprep.subr.bf16.mxu1 %v1652_v0 }
  0xbb   : > { %1223 = vmatpush3.bf16.msra.mxu1 %v1354_v18 }
  0xbc   : > { %1224 = vmatprep.subr.bf16.mxu1 %v1652_v0  ;;  %1189 = vmatpush3.bf16.xpose.msra.mxu0 %v1349_v22 }
  0xbd   : > { %1190 = vmatprep.subr.bf16.mxu0 %v1652_v0 }
  0xbf   : > { %1225 = vmatpush3.bf16.msra.mxu1 %v1355_v20 }
  0xc0   : > { %1226 = vmatprep.subr.bf16.mxu1 %v1652_v0 }
  0xc3   : > { %1227 = vmatpush3.bf16.msra.mxu1 %v1356_v21 }
  0xc4   : > { %1228 = vmatprep.subr.bf16.mxu1 %v1652_v0  ;;  %1191 = vmatpush3.bf16.xpose.msra.mxu0 %v1350_v24 }
  0xc5   : > { %1192 = vmatprep.subr.bf16.mxu0 %v1652_v0 }
  0xc7   : > { %1229 = vmatpush3.bf16.msra.mxu1 %v1357_v23 }
  0xc8   : > { %1230 = vmatprep.subr.bf16.mxu1 %v1652_v0 }
  0xcb   : > { %1231 = vmatpush3.bf16.msra.mxu1 %v1358_v26 }
  0xcc   : > { %1193 = vmatpush3.bf16.xpose.msra.mxu0 %v1351_v25  ;;  %1232 = vmatprep.subr.bf16.mxu1 %v1652_v0 }
  0xcf   : > { %1233 = vmatpush3.bf16.msra.mxu1 %v1359_v27 }
  0xd3   : > { %1195 = vmatmul.mubr.bf16.vlgmr.msra.gmra.mrb[0].mxu0 %v449_v14 }
 0x122   : > { %v452_v37 = vpop.xlane.xlu0 %451 }
 0x123   : > { %v564_v38 = vadd.f32 %v1120_v36, %v452_v37 }
 0x185   : > { %v700_v29 = vpop.f32.mrb[0].mxu1 }
 0x186   : > { %v701_v30 = vadd.f32 %v1123_v28, %v700_v29  ;;  %v1216_v31 = vpop.f32.mrb[1].mxu1 }
 0x187   : > { %v703_v32 = vpop.f32.mrb[2].mxu1 }
 0x188   : > { %v706_v33 = vmax.f32 %v701_v30, 0.0  ;;  %v1217_v34 = vpop.f32.mrb[3].mxu1 }
 0x18a   : > { %v707_v35 = vpack.c.bf16 %v706_v33, %v706_v33 }
 0x18c   : > { %1235 = vmatmul.mubr.bf16.vlgmr.msra.gmra.mrb[4].mxu1 %v707_v35 }
 0x1a6   : > { %v551_v39 = vpop.f32.mrb[0].mxu0 }
 0x1a7   : > { %v565_v40 = vmul.f32 2.0, %v551_v39  ;;  %v1196_v41 = vpop.f32.mrb[1].mxu0 }
 0x1a8   : > { %v554_v42 = vpop.f32.mrb[2].mxu0 }
 0x1a9   : > { %v566_v43 = vsub.f32 %v564_v38, %v565_v40  ;;  %v1197_v44 = vpop.f32.mrb[3].mxu0 }
 0x1ab   : > { %v567_v45 = vmax.f32 %v566_v43, 0.0 }
 0x1ad   : > { %v568_v46 = vadd.f32 1.0, %v567_v45 }
 0x1af   : > { %1360 = vrcp.f32 %v568_v46 }
 0x1b9   : > { %v1361_v47 = vpop.eup %1360 }
 0x1ba   : > { %571 = vadd.xlane.f32.xlu1 %v1361_v47 }
 0x247   : > { %v572_v48 = vpop.xlane.xlu1 %571 }
 0x248   : > { %1362 = vrcp.f32 %v572_v48 }
 0x252   : > { %v1363_v52 = vpop.eup %1362 }
 0x253   : > { %v574_v54 = vmul.f32 %v1363_v52, %v572_v48 }
 0x255   : > { %v575_v56 = vsub.f32 2.0, %v574_v54 }
 0x257   : > { %v576_v58 = vmul.f32 %v1363_v52, %v575_v56 }
 0x259   : > { %v577_v63 = vmul.f32 %v1361_v47, %v576_v58 }
 0x25b   : > { %v587_v3 = vmul.f32 %v1122_v62, %v577_v63  ;;  %578 = vst [vmem:[%s425_s11] sm:$0xff] %v577_v63 }
 0x25d   : > { %v588_v6 = vrot.slane %v587_v3, 4 }
 0x25f   : > { %v813_v57 = vpop.f32.mrb[4].mxu1  ;;  %v589_v8 = vadd.f32 %v588_v6, %v587_v3 }
 0x260   : > { %v814_v59 = vadd.f32 %v1132_v55, %v813_v57  ;;  %v1236_v60 = vpop.f32.mrb[5].mxu1 }
 0x261   : > { %v816_v61 = vpop.f32.mrb[6].mxu1  ;;  %v590_v0 = vrot.slane %v589_v8, 2 }
 0x262   : > { %819 = vst [vmem:[%s432_s12] sm:$0xff] %v814_v59  ;;  %v820_v1 = vsub.f32 %v814_v59, %v1940_v4  ;;  %v1237_v2 = vpop.f32.mrb[7].mxu1 }
 0x263   : > { %v591_v9 = vadd.f32 %v590_v0, %v589_v8 }
 0x264   : > { %v821_v5 = vmul.f32 %v1122_v62, %v820_v1 }
 0x265   : > { %v592_v10 = vrot.slane %v591_v9, 1 }
 0x266   : > { %v822_v7 = vmul.f32 %v821_v5, %v821_v5 }
 0x267   : > { %v593_v11 = vadd.f32 %v592_v10, %v591_v9 }
 0x268   : > { %823 = vadd.xlane.f32.xlu0 %v822_v7 }
 0x269   : > { %594 = vst [vmem:[%s2144_s27] sm:$0xff] %v593_v11 }
 0x26a   : > { %1491 = shalt.err (!%p1488_p4)
}
 0x26b   : > { %s1492_s12 = scalar_lea.hbm %s1995_s21, 128  ;;  %s1496_s19 = scalar_lea.hbm %s2133_s8, 384 }
 0x26c   : > { %p1493_p13 = scmp.ne.s32.totalorder %s1995_s21, %s1492_s12  ;;  %p1497_p8 = scmp.lt.u32.totalorder %s1995_s21, %s2133_s8 }
 0x26d   : > { %p1498_p12 = scmp.lt.u32.totalorder %s1496_s19, %s1492_s12  ;;  %p1500_p0 = scmp.lt.u32.totalorder %s1492_s12, %s1995_s21 }
 0x26e   : > { %p1494_p9 = pnand %p1493_p13, %p1868_p5 }
 0x26f   : > { %p1499_p6 = por %p1498_p12, %p1497_p8 }
 0x270   : > { %p1495_p10 = pneg %p1494_p9 }
 0x271   : > { %p1501_p3 = por %p1500_p0, %p1499_p6 }
 0x273   : > { %p1502_p7 = pnand %p1501_p3, %p1495_p10 }
 0x275   : > { %1505 = shalt.err (!%p1502_p7)
}
 0x276   : > { %1255 = dma.vmem_to_hbm [thread:$0]  (%p1868_p5), %s878_s25, 128, %s1995_s21, %s1997_s29  }
 0x277   : > { %s2021_s24 = scalar_lea.hbm %s2132_s7, %s1989_s22  ;;  %s864_s12 = sshll.u32 %s425_s11, 4  ;;  %s2025_s12 = int_to_ptr.vmem [resolvable:$true] %s864_s12 }
 0x278   : > { %s2165_s26 = sld [smem:[#allocation25_spill]]  ;;  %s836_s27 = scalar_lea.sflag [#allocation4], %s1913_s9 }
 0x279   : > { %s1506_s0 = scalar_lea.vmem %s2025_s12, 128  ;;  %s1655_s21 = smov [#allocation10]  }
 0x27a   : > { %p1507_p11 = scmp.ne.s32.totalorder %s2025_s12, %s1506_s0  ;;  %s1510_s25 = sshll.u32 %s1655_s21, 4  ;;  %s1511_s25 = int_to_ptr.vmem [resolvable:$false] %s1510_s25 }
 0x27b   : > { %s1512_s11 = scalar_lea.vmem %s1511_s25, 256  ;;  %p1513_p4 = scmp.lt.s32.totalorder %s2025_s12, %s1511_s25 }
 0x27c   : > { %p1508_p1 = pnand %p1507_p11, %p1868_p5  ;;  %p1514_p13 = scmp.lt.s32.totalorder %s1512_s11, %s1506_s0 }
 0x27e   : > { %s2031_s30 = scalar_lea.hbm %s2165_s26, %s1989_s22  ;;  %p1509_p2 = pneg %p1508_p1 }
 0x27f   : > { %p1515_p9 = por %p1514_p13, %p1513_p4 }
 0x281   : > { %p1516_p10 = pnand %p1515_p9, %p1509_p2 }
 0x283   : > { %1519 = shalt.err (!%p1516_p10)
}
 0x284   : > { %s1520_s23 = scalar_lea.hbm %s2021_s24, 128  ;;  %s1524_s19 = scalar_lea.hbm %s2132_s7, 384 }
 0x285   : > { %p1521_p8 = scmp.ne.s32.totalorder %s2021_s24, %s1520_s23  ;;  %p1525_p0 = scmp.lt.u32.totalorder %s2021_s24, %s2132_s7 }
 0x286   : > { %p1526_p3 = scmp.lt.u32.totalorder %s1524_s19, %s1520_s23  ;;  %p1528_p11 = scmp.lt.u32.totalorder %s1520_s23, %s2021_s24 }
 0x287   : > { %p1522_p12 = pnand %p1521_p8, %p1868_p5 }
 0x288   : > { %p1527_p7 = por %p1526_p3, %p1525_p0 }
 0x289   : > { %p1523_p6 = pneg %p1522_p12 }
 0x28a   : > { %p1529_p1 = por %p1528_p11, %p1527_p7 }
 0x28c   : > { %p1530_p2 = pnand %p1529_p1, %p1523_p6 }
 0x28e   : > { %1533 = shalt.err (!%p1530_p2)
}
 0x28f   : > { %1254 = dma.vmem_to_hbm [thread:$0]  (%p1868_p5), %s2025_s12, 128, %s2021_s24, %s836_s27  }
 0x290   : > { %s2166_s0 = scalar_lea.vmem [#allocation13], %s1916_s10  ;;  %s1656_s28 = smov [#allocation13]  }
 0x291   : > { %s890_s11 = sshll.u32 %s2166_s0, 4  ;;  %s1538_s23 = sshll.u32 %s1656_s28, 4  ;;  %s891_s11 = int_to_ptr.vmem [resolvable:$true] %s890_s11  ;;  %s1539_s23 = int_to_ptr.vmem [resolvable:$false] %s1538_s23 }
 0x292   : > { %s1534_s17 = scalar_lea.vmem %s891_s11, 128  ;;  %s1540_s19 = scalar_lea.vmem %s1539_s23, 256 }
 0x293   : > { %p1535_p4 = scmp.ne.s32.totalorder %s891_s11, %s1534_s17  ;;  %p1541_p10 = scmp.lt.s32.totalorder %s891_s11, %s1539_s23 }
 0x294   : > { %p1542_p8 = scmp.lt.s32.totalorder %s1540_s19, %s1534_s17 }
 0x295   : > { %p1536_p13 = pnand %p1535_p4, %p1868_p5 }
 0x296   : > { %p1543_p12 = por %p1542_p8, %p1541_p10 }
 0x297   : > { %p1537_p9 = pneg %p1536_p13 }
 0x299   : > { %p1544_p6 = pnand %p1543_p12, %p1537_p9 }
 0x29b   : > { %1547 = shalt.err (!%p1544_p6)
}
 0x29c   : > { %s1548_s27 = scalar_lea.hbm %s2031_s30, 128  ;;  %s1552_s21 = scalar_lea.hbm %s2165_s26, 384 }
 0x29d   : > { %p1549_p0 = scmp.ne.s32.totalorder %s2031_s30, %s1548_s27  ;;  %p1553_p11 = scmp.lt.u32.totalorder %s2031_s30, %s2165_s26 }
 0x29e   : > { %p1554_p1 = scmp.lt.u32.totalorder %s1552_s21, %s1548_s27  ;;  %p1556_p4 = scmp.lt.u32.totalorder %s1548_s27, %s2031_s30 }
 0x29f   : > { %p1550_p3 = pnand %p1549_p0, %p1868_p5 }
 0x2a0   : > { %p1555_p2 = por %p1554_p1, %p1553_p11 }
 0x2a1   : > { %p1551_p7 = pneg %p1550_p3 }
 0x2a2   : > { %p1557_p13 = por %p1556_p4, %p1555_p2 }
 0x2a4   : > { %p1558_p9 = pnand %p1557_p13, %p1551_p7 }
 0x2a6   : > { %1561 = shalt.err (!%p1558_p9)
}
 0x2a7   : > { %1256 = dma.vmem_to_hbm [thread:$0]  (%p1868_p5), %s891_s11, 128, %s2031_s30, %s1997_s29  }
 0x2a8   : > { %s446_s17 = scalar_lea.vmem [#allocation14], %s1916_s10  ;;  %s2167_s12 = sld [smem:[#allocation26_spill]] }
 0x2a9   : > { %s903_s28 = sshll.u32 %s446_s17, 4  ;;  %s851_s29 = scalar_lea.sflag [#allocation15], %s1913_s9  ;;  %s2082_s28 = int_to_ptr.vmem [resolvable:$true] %s903_s28 }
 0x2aa   : > { %s1562_s30 = scalar_lea.vmem %s2082_s28, 128  ;;  %s1657_s10 = smov [#allocation14]  }
 0x2ab   : > { %p1563_p10 = scmp.ne.s32.totalorder %s2082_s28, %s1562_s30  ;;  %s1566_s11 = sshll.u32 %s1657_s10, 4  ;;  %s1567_s11 = int_to_ptr.vmem [resolvable:$false] %s1566_s11 }
 0x2ac   : > { %s1568_s25 = scalar_lea.vmem %s1567_s11, 256  ;;  %p1569_p6 = scmp.lt.s32.totalorder %s2082_s28, %s1567_s11 }
 0x2ad   : > { %p1564_p8 = pnand %p1563_p10, %p1868_p5  ;;  %p1570_p0 = scmp.lt.s32.totalorder %s1568_s25, %s1562_s30 }
 0x2ae   : > { %s2080_s21 = scalar_lea.hbm %s2167_s12, %s1989_s22 }
 0x2af   : > { %p1565_p12 = pneg %p1564_p8  ;;  %p1571_p3 = por %p1570_p0, %p1569_p6 }
 0x2b1   : > { %p1572_p7 = pnand %p1571_p3, %p1565_p12 }
 0x2f5   : > { %v824_v4 = vpop.xlane.xlu0 %823 }
 0x2f6   : > { %v825_v12 = vrot.slane %v824_v4, 4 }
 0x2f8   : > { %v826_v13 = vadd.f32 %v825_v12, %v824_v4 }
 0x2fa   : > { %v827_v14 = vrot.slane %v826_v13, 2 }
 0x2fc   : > { %v828_v15 = vadd.f32 %v827_v14, %v826_v13 }
 0x2fe   : > { %v829_v16 = vrot.slane %v828_v15, 1 }
 0x300   : > { %v830_v17 = vadd.f32 %v829_v16, %v828_v15 }
 0x302   : > { %1238 = vpush %v830_v17 }
 0x333   : > { %s1239_s23 = spop %1238 }
 0x334   : > { %s832_s19 = smul.f32 0.0015625, %s1239_s23 }
 0x336   : > { %v833_v18 = vstv %s832_s19 }
 0x337   : > { %834 = vst [vmem:[%s446_s17] sm:$0xff] %v833_v18 }
 0x338   : > { %1575 = shalt.err (!%p1572_p7)
}
 0x339   : > { %s1576_s9 = scalar_lea.hbm %s2080_s21, 128  ;;  %s1580_s17 = scalar_lea.hbm %s2167_s12, 384 }
 0x33a   : > { %p1577_p11 = scmp.ne.s32.totalorder %s2080_s21, %s1576_s9  ;;  %p1581_p4 = scmp.lt.u32.totalorder %s2080_s21, %s2167_s12 }
 0x33b   : > { %p1582_p13 = scmp.lt.u32.totalorder %s1580_s17, %s1576_s9  ;;  %p1584_p10 = scmp.lt.u32.totalorder %s1576_s9, %s2080_s21 }
 0x33c   : > { %p1578_p1 = pnand %p1577_p11, %p1868_p5 }
 0x33d   : > { %p1583_p9 = por %p1582_p13, %p1581_p4 }
 0x33e   : > { %p1579_p2 = pneg %p1578_p1 }
 0x33f   : > { %p1585_p8 = por %p1584_p10, %p1583_p9 }
 0x341   : > { %p1586_p12 = pnand %p1585_p8, %p1579_p2 }
 0x343   : > { %1589 = shalt.err (!%p1586_p12)
}
 0x344   : > { %1257 = dma.vmem_to_hbm [thread:$0]  (%p1868_p5), %s2082_s28, 128, %s2080_s21, %s851_s29  }
 0x345 PF: > { %s2168_s27 = sld [smem:[#allocation22_spill]]  ;;  %s2169_s24 = sld [smem:[#allocation23_spill]] }
 0x346   : > { %p1296_p6 = scmp.ge.s32.totalorder %s1644_s16, 2 }
 0x34b   : > { %s915_s30 = sand.u32 1, %s2168_s27   ;;  %p2170_p0 = scmp.ne.s32.totalorder %s2169_s24, 0 }
 0x34c   : > { %s916_s10 = scalar_lea.sflag [#allocation4], %s915_s30 }
 0x34d   : > { %p1277_p3 = pnand %p1296_p6, %p2170_p0 }
 0x34f   : > { %1619 = dma.done.wait (!%p1277_p3), %s916_s10, 128  }
 0x350   : > { %1621 = vsyncadd (!%p1277_p3), %s916_s10, 4294967168  ;;  %s2171_s11 = sadd.s32 4294967294, %s1644_s16  }
 0x351   : > { %s924_s25 = sand.u32 1, %s2171_s11  }
 0x352   : > { %s925_s9 = scalar_lea.sflag [#allocation12], %s924_s25 }
 0x353   : > { %1623 = dma.done.wait (!%p1277_p3), %s925_s9, 256  }
 0x354   : > { %1625 = vsyncadd (!%p1277_p3), %s925_s9, 4294967040  ;;  %s943_s20 = scalar_lea.sflag [#allocation15], %s915_s30 }
 0x355   : > { %1627 = dma.done.wait (!%p1277_p3), %s943_s20, 128  }
 0x356   : > { %1629 = vsyncadd (!%p1277_p3), %s943_s20, 4294967168  ;;  %s2172_s28 = smov %s1864_s13  ;;  %p32_p5 = scmp.ge.s32.totalorder %s1854_s18, 5  }
 0x357   : > { %s2173_s13 = smov %s1636_s14  ;;  %s2174_s14 = smov %s1640_s15 }
 0x358   : > { %s2175_s15 = smov %s2172_s28  ;;  %s2176_s16 = smov %s1854_s18 }
 0x359   :  { %34 = sbr.rel (!%p32_p5) target bundleno = 15 (0xf), region = 154 }
 0x360   :  { %948 = vsyncpa [#allocation3], 1 }
 0x361   :  { %950 = vsyncpa [#allocation3 + $0x1], 1 }
 0x362   :  { %951 = vsyncpa [#allocation6], 1 }
 0x363   :  { %952 = vsyncpa [#allocation9], 1 }
 0x364   :  { %953 = vsyncpa [#allocation4], 1 }
 0x365   :  { %955 = vsyncpa [#allocation4 + $0x1], 1 }
 0x366   :  { %956 = vsyncpa [#allocation12], 1 }
 0x367   :  { %958 = vsyncpa [#allocation12 + $0x1], 1 }
 0x368   :  { %959 = vsyncpa [#allocation15], 1 }
 0x369   :  { %961 = vsyncpa [#allocation15 + $0x1], 1 }

</bundles_post_ra>
